<compile_context>
chip_gen: v6e
topology: v6e:2x2x1
jax: 0.10.0
libtpu: 0.0.40
codegen_flags: <defaults>
</compile_context>

<pallas_src>
import functools

import jax
import jax.numpy as jnp
from jax.experimental import pallas as pl
from jax.experimental.pallas import tpu as pltpu

HIDDEN = 128      # hidden width of the PyTorch module
LANE = 128        # TPU lane width
SUBLANE = 8       # TPU sublane width


def _round_up(x, m):
    return (x + m - 1) // m * m


# ---------------------------------------------------------------------------
# Kernel: fused forward pass for one batch tile.
#   x        (tm, state_dim)      bf16
#   w1       (state_dim, 128)     bf16
#   w2       (128, 128)           bf16
#   w_heads  (128, 2*a_pad)       bf16   [ wmu cols | wsg cols ], zero-padded
#   b_all    (1, 256 + 2*a_pad)   f32    [ b1 | b2 | bmu(pad) | bsg(pad) ]
#   out      (tm, 2*a_pad)               [ tanh cols | softplus cols ]
# ---------------------------------------------------------------------------
def policy_kernel(x_ref, w1_ref, w2_ref, wh_ref, b_ref, out_ref, *, a_pad):
    bf16 = jnp.bfloat16
    head_out = 2 * a_pad
    b1 = b_ref[:, 0:HIDDEN]
    b2 = b_ref[:, HIDDEN:2 * HIDDEN]
    bh = b_ref[:, 2 * HIDDEN:2 * HIDDEN + head_out]

    # x arrives already in bf16 -> no in-kernel cast, f32 accumulation.
    h1 = jnp.dot(x_ref[...], w1_ref[...],
                 preferred_element_type=jnp.float32) + b1
    h1 = jnp.maximum(h1, 0.0)

    h2 = jnp.dot(h1.astype(bf16), w2_ref[...],
                 preferred_element_type=jnp.float32) + b2
    h2 = jnp.maximum(h2, 0.0)

    # Fused heads: one MXU push for mu and sigma together.
    z = jnp.dot(h2.astype(bf16), wh_ref[...],
                preferred_element_type=jnp.float32) + bh

    if a_pad % LANE == 0:
        # Lane-aligned split: run tanh / softplus only on their own halves.
        zm = z[:, :a_pad]
        zs = z[:, a_pad:]
        out_ref[:, :a_pad] = jnp.tanh(zm).astype(out_ref.dtype)
        out_ref[:, a_pad:] = (jnp.maximum(zs, 0.0)
                              + jnp.log1p(jnp.exp(-jnp.abs(zs)))
                              ).astype(out_ref.dtype)
    else:
        # Small action_dim (a_pad == 64): keep the select, but build the mask
        # from a (1, head_out) iota (broadcast over rows), not a tile-sized one.
        mu = jnp.tanh(z)
        # numerically stable softplus: max(z,0) + log1p(exp(-|z|))
        sigma = jnp.maximum(z, 0.0) + jnp.log1p(jnp.exp(-jnp.abs(z)))
        col = jax.lax.broadcasted_iota(jnp.int32, (1, head_out), 1)
        out_ref[...] = jnp.where(col < a_pad, mu, sigma).astype(out_ref.dtype)


# ---------------------------------------------------------------------------
# One-time parameter packing (bf16 cast + head/bias fusion).  No feature-axis
# padding of x / w1 anymore.
# ---------------------------------------------------------------------------
def pack_params(params, state_dim, action_dim):
    w1, b1, w2, b2, wmu, bmu, wsg, bsg = params
    a_pad = _round_up(max(action_dim, 1), LANE // 2)   # 2*a_pad multiple of 128
    head_out = 2 * a_pad

    bf16 = jnp.bfloat16
    w1p = w1.astype(bf16)                               # (state_dim, 128)
    w2p = w2.astype(bf16)                               # (128, 128)
    whp = jnp.zeros((HIDDEN, head_out), bf16)
    whp = whp.at[:, 0:action_dim].set(wmu.astype(bf16))
    whp = whp.at[:, a_pad:a_pad + action_dim].set(wsg.astype(bf16))

    b_all = jnp.zeros((1, 2 * HIDDEN + head_out), jnp.float32)
    b_all = b_all.at[0, 0:HIDDEN].set(b1)
    b_all = b_all.at[0, HIDDEN:2 * HIDDEN].set(b2)
    b_all = b_all.at[0, 2 * HIDDEN:2 * HIDDEN + action_dim].set(bmu)
    b_all = b_all.at[0, 2 * HIDDEN + a_pad:2 * HIDDEN + a_pad + action_dim].set(bsg)

    meta = dict(state_dim=state_dim, action_dim=action_dim,
                a_pad=a_pad, head_out=head_out)
    return (w1p, w2p, whp, b_all), meta


def _vmem_estimate(tile, state_dim, head_out, bias_w, out_itemsize):
    x_bytes = 2 * tile * state_dim * 2                 # bf16 x, double-buffered
    out_bytes = 2 * tile * head_out * out_itemsize     # out, double-buffered
    w_bytes = 2 * 2 * (state_dim * HIDDEN + HIDDEN * HIDDEN + HIDDEN * head_out)
    b_bytes = 2 * 4 * bias_w
    tmp_bytes = 8 * tile * max(HIDDEN, head_out) * 4   # f32 intermediates
    return x_bytes + out_bytes + w_bytes + b_bytes + tmp_bytes


# ---------------------------------------------------------------------------
# Wrapper: batch-tiled pallas_call, weights resident across the grid.
# ---------------------------------------------------------------------------
def policy_forward(x, packed, meta, *, tm=1024, out_dtype=jnp.float32,
                   return_packed=False):
    w1p, w2p, whp, b_all = packed
    batch = x.shape[0]
    state_dim = meta["state_dim"]
    action_dim = meta["action_dim"]
    a_pad = meta["a_pad"]
    head_out = meta["head_out"]
    bias_w = b_all.shape[1]

    # --- batch tiling ------------------------------------------------------
    # Pad batch only to a multiple of 8; pick the number of grid steps so the
    # tile stays <= tm (amortizing per-step overhead) with minimal tail waste.
    # Force >=2 steps for large batches so the "parallel" grid axis can shard
    # across both v7x TensorCores (costs one extra ~0.35us step on v5e/v6e).
    pb8 = _round_up(batch, SUBLANE)
    min_steps = 2 if pb8 > 512 else 1
    steps = max(pl.cdiv(pb8, tm), min_steps)
    tile = _round_up(pl.cdiv(pb8, steps), SUBLANE)
    padded_batch = tile * steps

    # Stream x as bf16 (it is truncated to bf16 at the MXU input anyway).
    xb = x.astype(jnp.bfloat16)
    if padded_batch != batch:
        xb = jnp.pad(xb, ((0, padded_batch - batch), (0, 0)))

    vmem_limit = int(min(48 << 20,
                         max(32 << 20,
                             2 * _vmem_estimate(tile, state_dim, head_out,
                                                bias_w,
                                                jnp.dtype(out_dtype).itemsize))))

    out = pl.pallas_call(
        functools.partial(policy_kernel, a_pad=a_pad),
        out_shape=jax.ShapeDtypeStruct((padded_batch, head_out), out_dtype),
        grid=(steps,),
        in_specs=[
            pl.BlockSpec((tile, state_dim), lambda i: (i, 0)),      # x: batch-tiled
            pl.BlockSpec((state_dim, HIDDEN), lambda i: (0, 0)),    # weights resident
            pl.BlockSpec((HIDDEN, HIDDEN), lambda i: (0, 0)),
            pl.BlockSpec((HIDDEN, head_out), lambda i: (0, 0)),
            pl.BlockSpec((1, bias_w), lambda i: (0, 0)),
        ],
        out_specs=pl.BlockSpec((tile, head_out), lambda i: (i, 0)),
        compiler_params=pltpu.CompilerParams(
            dimension_semantics=("parallel",),
            vmem_limit_bytes=vmem_limit),
    )(xb, w1p, w2p, whp, b_all)

    if return_packed:
        # Padded slab: cols [0, a_pad) are mu, cols [a_pad, 2*a_pad) are sigma,
        # rows [batch, padded_batch) are padding.  No recompaction pass.
        return out

    mu = out[:batch, :action_dim]
    sigma = out[:batch, a_pad:a_pad + action_dim]
    return mu, sigma


# ---------------------------------------------------------------------------
# Synthetic init (PyTorch-style uniform bounds) and references.
# ---------------------------------------------------------------------------
def init_params(key, state_dim, action_dim, hidden=HIDDEN):
    ks = jax.random.split(key, 8)

    def lin(kw, kb, fan_in, fan_out):
        bound = 1.0 / jnp.sqrt(fan_in)
        w = jax.random.uniform(kw, (fan_in, fan_out), jnp.float32, -bound, bound)
        b = jax.random.uniform(kb, (fan_out,), jnp.float32, -bound, bound)
        return w, b

    w1, b1 = lin(ks[0], ks[1], state_dim, hidden)
    w2, b2 = lin(ks[2], ks[3], hidden, hidden)
    wmu, bmu = lin(ks[4], ks[5], hidden, action_dim)
    wsg, bsg = lin(ks[6], ks[7], hidden, action_dim)
    return (w1, b1, w2, b2, wmu, bmu, wsg, bsg)


def policy_reference_bf16(x, params):
    """Reference with the same bf16-input / f32-accumulate matmul recipe."""
    w1, b1, w2, b2, wmu, bmu, wsg, bsg = params
    bf = jnp.bfloat16

    def mm(a, w):
        return jnp.dot(a.astype(bf), w.astype(bf),
                       preferred_element_type=jnp.float32)

    h = jnp.maximum(mm(x, w1) + b1, 0.0)
    h = jnp.maximum(mm(h, w2) + b2, 0.0)
    mu = jnp.tanh(mm(h, wmu) + bmu)
    sigma = jax.nn.softplus(mm(h, wsg) + bsg)
    return mu, sigma


def policy_reference_f32(x, params):
    w1, b1, w2, b2, wmu, bmu, wsg, bsg = params
    h = jnp.maximum(x @ w1 + b1, 0.0)
    h = jnp.maximum(h @ w2 + b2, 0.0)
    return jnp.tanh(h @ wmu + bmu), jax.nn.softplus(h @ wsg + bsg)


if __name__ == "__main__":
    key = jax.random.PRNGKey(0)
    k_x, k_p, k_x2 = jax.random.split(key, 3)

    batch, state_dim, action_dim = 8, 32, 8
    x = jax.random.normal(k_x, (batch, state_dim), jnp.float32)
    params = init_params(k_p, state_dim, action_dim)
    packed, meta = pack_params(params, state_dim, action_dim)

    mu, sigma = policy_forward(x, packed, meta)
    jax.block_until_ready((mu, sigma))

    # Tight check vs. a reference that uses the same bf16 matmul recipe.
    mu_q, sigma_q = policy_reference_bf16(x, params)
    assert jnp.allclose(mu, mu_q, atol=5e-3, rtol=5e-3)
    assert jnp.allclose(sigma, sigma_q, atol=5e-3, rtol=5e-3)

    # Loose sanity check vs. the pure-f32 module semantics.
    mu_f, sigma_f = policy_reference_f32(x, params)
    assert jnp.allclose(mu, mu_f, atol=3e-2, rtol=3e-2)
    assert jnp.allclose(sigma, sigma_f, atol=3e-2, rtol=3e-2)

    # Exercise the multi-step / tail-padded path (batch not a multiple of 8,
    # >512 rows -> 2 grid steps so both v7x cores get work).
    batch2 = 1000
    x2 = jax.random.normal(k_x2, (batch2, state_dim), jnp.float32)
    mu2, sigma2 = policy_forward(x2, packed, meta)
    jax.block_until_ready((mu2, sigma2))
    mu2_q, sigma2_q = policy_reference_bf16(x2, params)
    assert mu2.shape == (batch2, action_dim) and sigma2.shape == (batch2, action_dim)
    assert jnp.allclose(mu2, mu2_q, atol=5e-3, rtol=5e-3)
    assert jnp.allclose(sigma2, sigma2_q, atol=5e-3, rtol=5e-3)

    print("KERNEL_OK")
</pallas_src>

<mosaic_0001>
module attributes {stable_mosaic.version = 11 : i64} {
  func.func @policy_kernel(%arg0: i32, %arg1: memref<8x32xbf16, #tpu.memory_space<vmem>>, %arg2: memref<32x128xbf16, #tpu.memory_space<vmem>>, %arg3: memref<128x128xbf16, #tpu.memory_space<vmem>>, %arg4: memref<128x128xbf16, #tpu.memory_space<vmem>>, %arg5: memref<1x384xf32, #tpu.memory_space<vmem>>, %arg6: memref<8x128xf32, #tpu.memory_space<vmem>>) attributes {dimension_semantics = [#tpu.dimension_semantics<parallel>], iteration_bounds = array<i64: 1>, scalar_prefetch = 0 : i64, scratch_operands = 0 : i64, tpu.core_type = #tpu.core_type<tc>, window_params = [{transform_indices = @transform_0, window_bounds = array<i64: 8, 32>}, {pipeline_mode = #tpu.pipeline_mode<synchronous>, transform_indices = @transform_1, window_bounds = array<i64: 32, 128>}, {pipeline_mode = #tpu.pipeline_mode<synchronous>, transform_indices = @transform_2, window_bounds = array<i64: 128, 128>}, {pipeline_mode = #tpu.pipeline_mode<synchronous>, transform_indices = @transform_3, window_bounds = array<i64: 128, 128>}, {pipeline_mode = #tpu.pipeline_mode<synchronous>, transform_indices = @transform_4, window_bounds = array<i64: 1, 384>}, {transform_indices = @transform_5, window_bounds = array<i64: 8, 128>}]} {
    %c0 = arith.constant 0 : index
    %c0_0 = arith.constant 0 : index
    %0 = vector.load %arg5[%c0, %c0_0] : memref<1x384xf32, #tpu.memory_space<vmem>>, vector<1x128xf32>
    %c0_1 = arith.constant 0 : index
    %c128 = arith.constant 128 : index
    %1 = vector.load %arg5[%c0_1, %c128] : memref<1x384xf32, #tpu.memory_space<vmem>>, vector<1x128xf32>
    %c0_2 = arith.constant 0 : index
    %c256 = arith.constant 256 : index
    %2 = vector.load %arg5[%c0_2, %c256] : memref<1x384xf32, #tpu.memory_space<vmem>>, vector<1x128xf32>
    %c0_3 = arith.constant 0 : index
    %c0_4 = arith.constant 0 : index
    %3 = vector.load %arg1[%c0_3, %c0_4] : memref<8x32xbf16, #tpu.memory_space<vmem>>, vector<8x32xbf16>
    %c0_5 = arith.constant 0 : index
    %c0_6 = arith.constant 0 : index
    %4 = vector.load %arg2[%c0_5, %c0_6] : memref<32x128xbf16, #tpu.memory_space<vmem>>, vector<32x128xbf16>
    %cst = arith.constant dense<0.000000e+00> : vector<8x128xf32>
    %5 = tpu.matmul %3, %4, %cst {dimension_numbers = #tpu.dot_dimension_numbers<[1], [0], [0], [1], [0, 0, 1, 1], [], []>} : vector<8x32xbf16>, vector<32x128xbf16>, vector<8x128xf32> -> vector<8x128xf32>
    %6 = vector.broadcast %0 : vector<1x128xf32> to vector<8x128xf32>
    %7 = arith.addf %5, %6 : vector<8x128xf32>
    %cst_7 = arith.constant 0.000000e+00 : f32
    %8 = vector.broadcast %cst_7 : f32 to vector<8x128xf32>
    %9 = arith.maximumf %7, %8 : vector<8x128xf32>
    %10 = arith.truncf %9 : vector<8x128xf32> to vector<8x128xbf16>
    %c0_8 = arith.constant 0 : index
    %c0_9 = arith.constant 0 : index
    %11 = vector.load %arg3[%c0_8, %c0_9] : memref<128x128xbf16, #tpu.memory_space<vmem>>, vector<128x128xbf16>
    %cst_10 = arith.constant dense<0.000000e+00> : vector<8x128xf32>
    %12 = tpu.matmul %10, %11, %cst_10 {dimension_numbers = #tpu.dot_dimension_numbers<[1], [0], [0], [1], [0, 0, 1, 1], [], []>} : vector<8x128xbf16>, vector<128x128xbf16>, vector<8x128xf32> -> vector<8x128xf32>
    %13 = vector.broadcast %1 : vector<1x128xf32> to vector<8x128xf32>
    %14 = arith.addf %12, %13 : vector<8x128xf32>
    %cst_11 = arith.constant 0.000000e+00 : f32
    %15 = vector.broadcast %cst_11 : f32 to vector<8x128xf32>
    %16 = arith.maximumf %14, %15 : vector<8x128xf32>
    %17 = arith.truncf %16 : vector<8x128xf32> to vector<8x128xbf16>
    %c0_12 = arith.constant 0 : index
    %c0_13 = arith.constant 0 : index
    %18 = vector.load %arg4[%c0_12, %c0_13] : memref<128x128xbf16, #tpu.memory_space<vmem>>, vector<128x128xbf16>
    %cst_14 = arith.constant dense<0.000000e+00> : vector<8x128xf32>
    %19 = tpu.matmul %17, %18, %cst_14 {dimension_numbers = #tpu.dot_dimension_numbers<[1], [0], [0], [1], [0, 0, 1, 1], [], []>} : vector<8x128xbf16>, vector<128x128xbf16>, vector<8x128xf32> -> vector<8x128xf32>
    %20 = vector.broadcast %2 : vector<1x128xf32> to vector<8x128xf32>
    %21 = arith.addf %19, %20 : vector<8x128xf32>
    %22 = math.tanh %21 : vector<8x128xf32>
    %cst_15 = arith.constant 0.000000e+00 : f32
    %23 = vector.broadcast %cst_15 : f32 to vector<8x128xf32>
    %24 = arith.maximumf %21, %23 : vector<8x128xf32>
    %25 = math.absf %21 : vector<8x128xf32>
    %cst_16 = arith.constant 0.000000e+00 : f32
    %26 = vector.broadcast %cst_16 : f32 to vector<8x128xf32>
    %27 = arith.subf %26, %25 : vector<8x128xf32>
    %28 = math.exp %27 : vector<8x128xf32>
    %29 = math.log1p %28 : vector<8x128xf32>
    %30 = arith.addf %24, %29 : vector<8x128xf32>
    %31 = tpu.iota {dimensions = array<i32: 1>} : vector<1x128xi32>
    %c64_i32 = arith.constant 64 : i32
    %32 = vector.broadcast %c64_i32 : i32 to vector<1x128xi32>
    %33 = arith.cmpi slt, %31, %32 : vector<1x128xi32>
    %34 = vector.shape_cast %33 : vector<1x128xi1> to vector<1x128xi1>
    %35 = vector.broadcast %34 : vector<1x128xi1> to vector<8x128xi1>
    %36 = arith.select %35, %22, %30 : vector<8x128xi1>, vector<8x128xf32>
    %c0_17 = arith.constant 0 : index
    %c0_18 = arith.constant 0 : index
    %37 = vector.load %arg6[%c0_17, %c0_18] : memref<8x128xf32, #tpu.memory_space<vmem>>, vector<8x128xf32>
    tpu.vector_store %arg6[%c0_17, %c0_18], %36 {strides = array<i32>} : memref<8x128xf32, #tpu.memory_space<vmem>>, vector<8x128xf32>,
    return
  }
  func.func @transform_0(%arg0: i32) -> (i32, i32) {
    %c0_i32 = arith.constant 0 : i32
    %c0_i32_0 = arith.constant 0 : i32
    return %arg0, %c0_i32 : i32, i32
  }
  func.func @transform_1(%arg0: i32) -> (i32, i32) {
    %c0_i32 = arith.constant 0 : i32
    %c0_i32_0 = arith.constant 0 : i32
    %c0_i32_1 = arith.constant 0 : i32
    return %c0_i32, %c0_i32_0 : i32, i32
  }
  func.func @transform_2(%arg0: i32) -> (i32, i32) {
    %c0_i32 = arith.constant 0 : i32
    %c0_i32_0 = arith.constant 0 : i32
    %c0_i32_1 = arith.constant 0 : i32
    return %c0_i32, %c0_i32_0 : i32, i32
  }
  func.func @transform_3(%arg0: i32) -> (i32, i32) {
    %c0_i32 = arith.constant 0 : i32
    %c0_i32_0 = arith.constant 0 : i32
    %c0_i32_1 = arith.constant 0 : i32
    return %c0_i32, %c0_i32_0 : i32, i32
  }
  func.func @transform_4(%arg0: i32) -> (i32, i32) {
    %c0_i32 = arith.constant 0 : i32
    %c0_i32_0 = arith.constant 0 : i32
    %c0_i32_1 = arith.constant 0 : i32
    return %c0_i32, %c0_i32_0 : i32, i32
  }
  func.func @transform_5(%arg0: i32) -> (i32, i32) {
    %c0_i32 = arith.constant 0 : i32
    %c0_i32_0 = arith.constant 0 : i32
    return %arg0, %c0_i32 : i32, i32
  }
}

</mosaic_0001>

<bundles_post_ra>
// kernel: tpu_custom_call.1
= control target key start
LH: loop header
LB: loop body
LE: loop exit
PB: predicated region body
PF: predicated region fallthrough
CT: control target
= control target key end

     0   :  { %10 = vsyncpa [#allocation3], 0  ;;  %s737_s0 = inlined_call_operand.hbm [shape: bf16[8,32], index: 0, kind: input, shape index: {}]   ;;  %s738_s1 = inlined_call_operand.hbm [shape: bf16[32,128], index: 1, kind: input, shape index: {}]   ;;  %s739_s2 = inlined_call_operand.hbm [shape: bf16[128,128], index: 2, kind: input, shape index: {}]   ;;  %s740_s3 = inlined_call_operand.hbm [shape: bf16[128,128], index: 3, kind: input, shape index: {}]   ;;  %s741_s4 = inlined_call_operand.vmem [shape: f32[1,384], index: 4, kind: input, shape index: {}]   ;;  %s742_s5 = inlined_call_operand.hbm [shape: f32[8,128], index: 5, kind: output, shape index: {}]  }
   0x1   :  { %11 = vsyncpa [#allocation6], 0 }
   0x2   :  { %12 = vsyncpa [#allocation9], 0 }
   0x3   :  { %13 = vsyncpa [#allocation4], 0  ;;  %s641_s18 = smov [#allocation5]  }
   0x4   :  { %s29_s19 = sshll.u32 %s641_s18, 4  ;;  %s30_s19 = int_to_ptr.vmem [resolvable:$true] %s29_s19 }
   0x5   :  { %s541_s20 = scalar_lea.vmem %s30_s19, 256  ;;  %p546_p1 = scmp.lt.s32.totalorder %s30_s19, %s30_s19 }
   0x6   :  { %p542_p0 = scmp.ne.s32.totalorder %s30_s19, %s541_s20  ;;  %p547_p2 = scmp.lt.s32.totalorder %s541_s20, %s541_s20 }
   0x8   :  { %p548_p3 = por %p547_p2, %p546_p1 }
   0xa   :  { %p549_p4 = pnand %p548_p3, %p542_p0 }
   0xc   :  { %552 = shalt.err (!%p549_p4)
}
   0xd   :  { %s642_s21 = smov 64   ;;  %s643_s22 = smov 4  }
   0xe   :  { %35 = dma.hbm_to_vmem [thread:$0]  %s738_s1, 256, %s30_s19, [#allocation6], %s642_s21, %s642_s21, %s643_s22  }
   0xf   :  { %s644_s25 = smov [#allocation2]   ;;  %s645_s27 = smov [#allocation7]  }
  0x10   :  { %s20_s26 = sshll.u32 %s644_s25, 4  ;;  %s41_s28 = sshll.u32 %s645_s27, 4  ;;  %s21_s26 = int_to_ptr.vmem [resolvable:$true] %s20_s26  ;;  %s42_s28 = int_to_ptr.vmem [resolvable:$true] %s41_s28 }
  0x11   :  { %s561_s29 = scalar_lea.vmem %s21_s26, 64  ;;  %p566_p6 = scmp.lt.s32.totalorder %s21_s26, %s21_s26 }
  0x12   :  { %p562_p5 = scmp.ne.s32.totalorder %s21_s26, %s561_s29  ;;  %p567_p7 = scmp.lt.s32.totalorder %s561_s29, %s561_s29 }
  0x14   :  { %p568_p8 = por %p567_p7, %p566_p6 }
  0x16   :  { %p569_p9 = pnand %p568_p8, %p562_p5 }
  0x18   :  { %572 = shalt.err (!%p569_p9)
}
  0x19   :  { %23 = dma.hbm_to_vmem [thread:$0]  %s737_s0, 64, %s21_s26, [#allocation3]  }
  0x1a   :  { %s581_s7 = scalar_lea.vmem %s42_s28, 1024  ;;  %p586_p11 = scmp.lt.s32.totalorder %s42_s28, %s42_s28 }
  0x1b   :  { %p582_p10 = scmp.ne.s32.totalorder %s42_s28, %s581_s7  ;;  %p587_p12 = scmp.lt.s32.totalorder %s581_s7, %s581_s7 }
  0x1d   :  { %p588_p13 = por %p587_p12, %p586_p11 }
  0x1f   :  { %p589_p0 = pnand %p588_p13, %p582_p10 }
  0x21   :  { %592 = shalt.err (!%p589_p0)
}
  0x22   :  { %47 = dma.hbm_to_vmem [thread:$0]  %s739_s2, 1024, %s42_s28, [#allocation6], %s642_s21, %s642_s21, %s643_s22  }
  0x23   :  { %s646_s9 = smov [#allocation8]  }
  0x24   :  { %s53_s10 = sshll.u32 %s646_s9, 4  ;;  %s54_s10 = int_to_ptr.vmem [resolvable:$true] %s53_s10 }
  0x25   :  { %s601_s11 = scalar_lea.vmem %s54_s10, 1024  ;;  %p606_p2 = scmp.lt.s32.totalorder %s54_s10, %s54_s10 }
  0x26   :  { %p602_p1 = scmp.ne.s32.totalorder %s54_s10, %s601_s11  ;;  %p607_p3 = scmp.lt.s32.totalorder %s601_s11, %s601_s11 }
  0x28   :  { %p608_p4 = por %p607_p3, %p606_p2 }
  0x2a   :  { %p609_p5 = pnand %p608_p4, %p602_p1 }
  0x2c   :  { %612 = shalt.err (!%p609_p5)
}
  0x2d   :  { %59 = dma.hbm_to_vmem [thread:$0]  %s740_s3, 1024, %s54_s10, [#allocation9], %s642_s21, %s642_s21, %s643_s22  }
  0x2e   :  { %633 = dma.done.wait [#allocation3], 64  }
  0x2f   :  { %634 = vsyncadd [#allocation3], 4294967232 }
  0x30   :  { %635 = dma.done.wait [#allocation6], 1280  }
  0x31   :  { %636 = vsyncadd [#allocation6], 4294966016 }
  0x32   :  { %637 = dma.done.wait [#allocation9], 1024  }
  0x33   :  { %638 = vsyncadd [#allocation9], 4294966272  ;;  %v647_v0 = vmov 0.0   ;;  %vm648_vm0 = vmmov 0   ;;  %v509_v1 = vld [vmem:[#allocation5 + $0x8] sm:$0xff]   ;;  %v510_v2 = vld [vmem:[#allocation5] sm:$0xff]   ;;  %v385_v48 = vlaneseq }
  0x34   :  { %452 = vmatprep.subr.bf16.mxu0 %v647_v0  ;;  %456 = vmatprep.mubr.msk.bf16.mxu0 %vm648_vm0, %v647_v0  ;;  %v511_v3 = vld [vmem:[#allocation7 + $0x38] sm:$0xff]   ;;  %vm101_vm1 = vcmask 261120   ;;  %v512_v4 = vld [vmem:[#allocation7 + $0x30] sm:$0xff]   ;;  %v78_v5 = vld [vmem:[#allocation2] sm:$0xf] }
  0x35   :  { %460 = vmatprep.subr.bf16.mxu1 %v647_v0  ;;  %476 = vmatprep.mubr.msk.bf16.mxu1 %vm648_vm0, %v647_v0  ;;  %v513_v6 = vld [vmem:[#allocation7 + $0x28] sm:$0xff]   ;;  %v514_v7 = vld [vmem:[#allocation7 + $0x20] sm:$0xff]   ;;  %v515_v8 = vld [vmem:[#allocation7 + $0x18] sm:$0xff]   ;;  %v386_v51 = vand.u32 127, %v385_v48 }
  0x36   :  { %453 = vmatpush3.bf16.msra.mxu0 %v509_v1  ;;  %461 = vmatpush3.bf16.msra.mxu1 %v511_v3  ;;  %v516_v9 = vld [vmem:[#allocation7 + $0x10] sm:$0xff]   ;;  %v517_v10 = vld [vmem:[#allocation7 + $0x8] sm:$0xff]   ;;  %v518_v11 = vld [vmem:[#allocation7] sm:$0xff]  }
  0x37   :  { %454 = vmatprep.subr.bf16.mxu0 %v647_v0  ;;  %462 = vmatprep.subr.bf16.mxu1 %v647_v0  ;;  %v519_v12 = vld [vmem:[#allocation8 + $0x38] sm:$0xff]   ;;  %v520_v13 = vld [vmem:[#allocation8 + $0x30] sm:$0xff]   ;;  %v521_v14 = vld [vmem:[#allocation8 + $0x28] sm:$0xff]   ;;  %vm387_vm3 = vcmp.lt.s32.totalorder %v386_v51, 64 }
  0x38   :  { %v522_v15 = vld [vmem:[#allocation8 + $0x20] sm:$0xff]   ;;  %v523_v16 = vld [vmem:[#allocation8 + $0x18] sm:$0xff]   ;;  %v524_v17 = vld [vmem:[#allocation8 + $0x10] sm:$0xff]  }
  0x39   :  { %v409_v18 = vld [vmem:[%s741_s4] ss:$0 sm:$0xff]  ;;  %v526_v27 = vld [vmem:[#allocation8] sm:$0xff]   ;;  %v413_v28 = vld [vmem:[%s741_s4 + $0x1] ss:$0 sm:$0xff] }
  0x3a   :  { %455 = vmatpush3.bf16.msra.mxu0 %v510_v2  ;;  %463 = vmatpush3.bf16.msra.mxu1 %v512_v4  ;;  %v525_v26 = vld [vmem:[#allocation8 + $0x8] sm:$0xff]  }
  0x3b   :  { %480 = vmatprep.subr.bf16.mxu0 %v647_v0  ;;  %464 = vmatprep.subr.bf16.mxu1 %v647_v0  ;;  %v422_v36 = vld [vmem:[%s741_s4 + $0x2] ss:$0 sm:$0xff]  ;;  %s649_s4 = smov [#allocation10]  }
  0x3c   :  { %s398_s17 = sshll.u32 %s649_s4, 4  ;;  %s399_s17 = int_to_ptr.vmem [resolvable:$true] %s398_s17 }
  0x3d   :  { %457 = vmatmul.mubr.msk.bf16.vlgmr.msra.gmra.mxu0 %vm101_vm1, %v78_v5  ;;  %s613_s18 = scalar_lea.vmem %s399_s17, 128  ;;  %p618_p7 = scmp.lt.s32.totalorder %s399_s17, %s399_s17 }
  0x3e   :  { %496 = vmatprep.mubr.msk.bf16.mxu0 %vm648_vm0, %v647_v0  ;;  %465 = vmatpush3.bf16.msra.mxu1 %v513_v6  ;;  %p614_p6 = scmp.ne.s32.totalorder %s399_s17, %s613_s18  ;;  %p619_p8 = scmp.lt.s32.totalorder %s613_s18, %s613_s18 }
  0x3f   :  { %466 = vmatprep.subr.bf16.mxu1 %v647_v0  ;;  %481 = vmatpush3.bf16.msra.mxu0 %v519_v12 }
  0x40   :  { %482 = vmatprep.subr.bf16.mxu0 %v647_v0  ;;  %p620_p9 = por %p619_p8, %p618_p7 }
  0x42   :  { %467 = vmatpush3.bf16.msra.mxu1 %v514_v7  ;;  %p621_p10 = pnand %p620_p9, %p614_p6 }
  0x43   :  { %468 = vmatprep.subr.bf16.mxu1 %v647_v0  ;;  %483 = vmatpush3.bf16.msra.mxu0 %v520_v13 }
  0x44   :  { %484 = vmatprep.subr.bf16.mxu0 %v647_v0 }
  0x46   :  { %469 = vmatpush3.bf16.msra.mxu1 %v515_v8 }
  0x47   :  { %470 = vmatprep.subr.bf16.mxu1 %v647_v0  ;;  %485 = vmatpush3.bf16.msra.mxu0 %v521_v14 }
  0x48   :  { %486 = vmatprep.subr.bf16.mxu0 %v647_v0 }
  0x4a   :  { %471 = vmatpush3.bf16.msra.mxu1 %v516_v9 }
  0x4b   :  { %472 = vmatprep.subr.bf16.mxu1 %v647_v0  ;;  %487 = vmatpush3.bf16.msra.mxu0 %v522_v15 }
  0x4c   :  { %488 = vmatprep.subr.bf16.mxu0 %v647_v0 }
  0x4e   :  { %473 = vmatpush3.bf16.msra.mxu1 %v517_v10 }
  0x4f   :  { %474 = vmatprep.subr.bf16.mxu1 %v647_v0  ;;  %489 = vmatpush3.bf16.msra.mxu0 %v523_v16 }
  0x50   :  { %490 = vmatprep.subr.bf16.mxu0 %v647_v0 }
  0x52   :  { %475 = vmatpush3.bf16.msra.mxu1 %v518_v11 }
  0x53   :  { %491 = vmatpush3.bf16.msra.mxu0 %v524_v17 }
  0x54   :  { %492 = vmatprep.subr.bf16.mxu0 %v647_v0 }
  0x57   :  { %493 = vmatpush3.bf16.msra.mxu0 %v525_v26 }
  0x58   :  { %494 = vmatprep.subr.bf16.mxu0 %v647_v0 }
  0x5b   :  { %495 = vmatpush3.bf16.msra.mxu0 %v526_v27 }
  0xfd   :  { %v139_v19 = vpop.f32.mrf.mxu0 }
  0xfe   :  { %v140_v20 = vadd.f32 %v409_v18, %v139_v19 }
  0xff   :  { %v458_v21 = vpop.f32.mrf.mxu0 }
 0x100   :  { %v145_v22 = vmax.f32 %v140_v20, 0.0 }
 0x101   :  { %v142_v23 = vpop.f32.mrf.mxu0 }
 0x102   :  { %v146_v24 = vpack.c.bf16 %v145_v22, %v145_v22 }
 0x103   :  { %v459_v25 = vpop.f32.mrf.mxu0 }
 0x104   :  { %477 = vmatmul.mubr.bf16.vlgmr.msra.gmra.mxu1 %v146_v24 }
 0x1c4   :  { %v251_v29 = vpop.f32.mrf.mxu1 }
 0x1c5   :  { %v252_v30 = vadd.f32 %v413_v28, %v251_v29 }
 0x1c6   :  { %v478_v31 = vpop.f32.mrf.mxu1 }
 0x1c7   :  { %v257_v32 = vmax.f32 %v252_v30, 0.0 }
 0x1c8   :  { %v254_v33 = vpop.f32.mrf.mxu1 }
 0x1c9   :  { %v258_v34 = vpack.c.bf16 %v257_v32, %v257_v32 }
 0x1ca   :  { %v479_v35 = vpop.f32.mrf.mxu1 }
 0x1cb   :  { %497 = vmatmul.mubr.bf16.vlgmr.msra.gmra.mxu0 %v258_v34 }
 0x28b   :  { %v363_v37 = vpop.f32.mrf.mxu0 }
 0x28c   :  { %v364_v38 = vadd.f32 %v422_v36, %v363_v37 }
 0x28d   :  { %v498_v39 = vpop.f32.mrf.mxu0 }
 0x28e   :  { %v371_v40 = vand.u32 2147483647, %v364_v38  ;;  %v370_v55 = vmax.f32 %v364_v38, 0.0 }
 0x28f   :  { %v366_v41 = vpop.f32.mrf.mxu0 }
 0x290   :  { %v372_v42 = vsub.f32 0.0, %v371_v40 }
 0x291   :  { %v499_v43 = vpop.f32.mrf.mxu0 }
 0x292   :  { %v373_v44 = vmul.f32 1.442695, %v372_v42 }
 0x294   :  { %527 = vpow2.f32 %v373_v44 }
 0x2a1   :  { %v528_v45 = vpop.eup %527 }
 0x2a2   :  { %v375_v46 = vadd.f32 1.0, %v528_v45  ;;  %v378_v47 = vmul.f32 -0.5, %v528_v45  ;;  %v381_v50 = vand.u32 2147483647, %v528_v45 }
 0x2a4   :  { %529 = vlog2.f32 %v375_v46  ;;  %v379_v49 = vadd.f32 1.0, %v378_v47  ;;  %vm382_vm2 = vcmp.lt.f32.partialorder %v381_v50, 0.0004427343 }
 0x2a5   :  { %531 = vtanh.f32 %v364_v38 }
 0x2a6   :  { %v380_v54 = vmul.f32 %v528_v45, %v379_v49 }
 0x2b1   :  { %v530_v52 = vpop.eup %529 }
 0x2b2   :  { %v377_v53 = vmul.f32 0.6931472, %v530_v52  ;;  %v532_v58 = vpop.eup %531 }
 0x2b4   :  { %v383_v56 = vsel %vm382_vm2, %v380_v54, %v377_v53 }
 0x2b5   :  { %v384_v57 = vadd.f32 %v383_v56, %v370_v55 }
 0x2b7   :  { %v390_v59 = vsel %vm387_vm3, %v532_v58, %v384_v57 }
 0x2b8   :  { %391 = vst [vmem:[#allocation10] sm:$0xff] %v390_v59 }
 0x2b9   :  { %624 = shalt.err (!%p621_p10)
}
 0x2ba   :  { %401 = dma.vmem_to_hbm [thread:$0]  %s399_s17, 128, %s742_s5, [#allocation4]  }
 0x2bb   :  { %639 = dma.done.wait [#allocation4], 128  }
 0x2bc   :  { %640 = vsyncadd [#allocation4], 4294967168 }
 0x2bd   :  { %405 = vsyncpa [#allocation3], 1 }
 0x2be   :  { %406 = vsyncpa [#allocation6], 1 }
 0x2bf   :  { %407 = vsyncpa [#allocation9], 1 }
 0x2c0   :  { %408 = vsyncpa [#allocation4], 1 }

</bundles_post_ra>
